<compile_context>
chip_gen: v5e
topology: v5e:2x2
jax: 0.10.0
libtpu: 0.0.40
codegen_flags: <defaults>
</compile_context>

<pallas_src>
import jax
import jax.numpy as jnp
from jax import lax
from jax.experimental import pallas as pl
from jax.experimental.pallas import tpu as pltpu


def _round_up(x, m):
    return ((x + m - 1) // m) * m


def _sublane(dtype):
    # Sublane packing granularity: 8 for 32-bit, 16 for bf16, 32 for int8/fp8.
    return max(8, 32 // jnp.dtype(dtype).itemsize)


def _pick_tile_e(counts, row_bytes, tile_cap=8192):
    """Waste-aware edge-tile sweep.

    Minimizes  num_tiles * per-step-overhead  +  padded_bytes / HBM_BW,
    with a mild penalty on odd / tiny tile counts so both v7x TensorCores get
    work (harmless on single-TC v5e/v6e).
    """
    STEP_US = 0.35
    HBM_B_PER_US = 1.0e6  # ~1 TB/s nominal; only the relative weight matters.
    best_te, best_cost = 128, None
    for te in (128, 256, 512, 1024, 2048, 4096, 8192):
        if te > tile_cap:
            break
        tiles = sum(-(-c // te) for c in counts)
        padded_rows = sum((-(-c // te)) * te - c for c in counts)
        cost = tiles * STEP_US + padded_rows * row_bytes / HBM_B_PER_US
        if tiles % 2:
            cost *= 1.15                  # v7x megacore: prefer even tile count
        if tiles < 8:
            cost *= 1.0 + 0.05 * (8 - tiles)
        if best_cost is None or cost < best_cost:
            best_te, best_cost = te, cost
    return best_te


# -----------------------------------------------------------------------------
# Pallas kernel: one edge tile of   y^T = W[type] @ x^T + b[type]
# -----------------------------------------------------------------------------
def _grouped_linear_kernel(tile_type_ref, x_ref, w_ref, b_ref, o_ref):
    # tile_type_ref : SMEM [num_tiles] int32 (scalar-prefetched tile->type map)
    # x_ref : (TILE_E, Din)   natural edge_attr layout (no wrapper transpose)
    # w_ref : (T, Demb, Din)  whole stack, VMEM-resident for the entire launch
    # b_ref : (T, Demb, 1)    whole stack, f32, VMEM-resident
    # o_ref : (Demb, TILE_E)  lane-dense output block (y^T)
    ti = tile_type_ref[pl.program_id(0)]
    w = w_ref[ti]                                   # (Demb, Din)
    b = b_ref[ti]                                   # (Demb, 1), already f32
    acc = lax.dot_general(
        w, x_ref[...],
        dimension_numbers=(((1,), (1,)), ((), ())),  # contract Din with Din
        preferred_element_type=jnp.float32)          # -> (Demb, TILE_E) on MXU
    o_ref[...] = (acc + b).astype(o_ref.dtype)


# -----------------------------------------------------------------------------
# Fused grouped linear over all edge types (single pallas_call)
# -----------------------------------------------------------------------------
def hetero_linear_fused(edge_attrs, params, *, tile_e=None, out_dtype=None):
    """out[et] = edge_attrs[et] @ W[et].T + b[et]   for every edge type.

    edge_attrs : dict[str -> [E_t, d_in_t] array]
    params     : dict[str -> (W [d_out_t, d_in_t], b [d_out_t])]
    """
    outs = {}
    for t, x in edge_attrs.items():
        if x.shape[0] == 0:
            d_out = params[t][0].shape[0]
            outs[t] = jnp.zeros((0, d_out),
                                x.dtype if out_dtype is None else out_dtype)
    types = [t for t, x in edge_attrs.items() if x.shape[0] > 0]
    if not types:
        return outs

    x_dtype = edge_attrs[types[0]].dtype
    if out_dtype is None:
        out_dtype = x_dtype

    d_ins = [params[t][0].shape[1] for t in types]
    d_outs = [params[t][0].shape[0] for t in types]
    counts = [edge_attrs[t].shape[0] for t in types]

    sub = _sublane(x_dtype)                       # dtype-aware sublane rounding
    din_max = _round_up(max(d_ins), sub)
    demb_max = _round_up(max(d_outs), sub)

    if tile_e is None:
        row_bytes = (din_max + demb_max) * jnp.dtype(x_dtype).itemsize
        tile_e = _pick_tile_e(counts, row_bytes)
    tile_e = _round_up(int(tile_e), 128)          # lane-dense output stores

    # ---- pack x in NATURAL [E, d_in] layout (pad + concat, no transpose).
    #      Each type's segment is rounded to whole tiles so a tile never
    #      straddles two edge types. ---------------------------------------
    pieces, tile_types, row_off = [], [], {}
    total_rows = 0
    for ti, t in enumerate(types):
        x = edge_attrs[t]
        e_t, d_in = x.shape
        rows_t = _round_up(e_t, tile_e)
        row_off[t] = total_rows
        total_rows += rows_t
        tile_types.extend([ti] * (rows_t // tile_e))
        pieces.append(jnp.pad(x.astype(x_dtype),
                              ((0, rows_t - e_t), (0, din_max - d_in))))
    x_packed = jnp.concatenate(pieces, axis=0) if len(pieces) > 1 else pieces[0]

    # ---- stacked weights / biases (tiny; resident in VMEM for the launch) ----
    w_stack = jnp.zeros((len(types), demb_max, din_max), x_dtype)
    b_stack = jnp.zeros((len(types), demb_max, 1), jnp.float32)
    for ti, t in enumerate(types):
        w, b = params[t]
        w_stack = w_stack.at[ti, : w.shape[0], : w.shape[1]].set(w.astype(x_dtype))
        b_stack = b_stack.at[ti, : b.shape[0], 0].set(b.astype(jnp.float32))

    tile_type = jnp.asarray(tile_types, jnp.int32)
    num_tiles = total_rows // tile_e
    num_types = len(types)

    bytes_accessed = int(
        x_packed.size * x_packed.dtype.itemsize
        + w_stack.size * w_stack.dtype.itemsize
        + b_stack.size * 4
        + demb_max * total_rows * jnp.dtype(out_dtype).itemsize)

    out_t = pl.pallas_call(
        _grouped_linear_kernel,
        out_shape=jax.ShapeDtypeStruct((demb_max, total_rows), out_dtype),
        grid_spec=pltpu.PrefetchScalarGridSpec(
            num_scalar_prefetch=1,
            grid=(num_tiles,),
            in_specs=[
                # Natural-layout x tile: block i along the edge/row axis.
                pl.BlockSpec((tile_e, din_max), lambda i, tt: (i, 0)),
                # Whole W / b stacks: constant block index -> DMA'd once,
                # VMEM-resident; type is selected in the kernel body.
                pl.BlockSpec((num_types, demb_max, din_max),
                             lambda i, tt: (0, 0, 0)),
                pl.BlockSpec((num_types, demb_max, 1),
                             lambda i, tt: (0, 0, 0)),
            ],
            # Lane-dense y^T block: tile_e (>=128) lanes -> unmasked vst.
            out_specs=pl.BlockSpec((demb_max, tile_e), lambda i, tt: (0, i)),
        ),
        compiler_params=pltpu.CompilerParams(
            # Independent output tiles -> shard the edge-tile axis across
            # TensorCores (matters on v7x megacore).
            dimension_semantics=("parallel",),
        ),
        cost_estimate=pl.CostEstimate(
            flops=2 * total_rows * din_max * demb_max,
            transcendentals=0,
            bytes_accessed=bytes_accessed,
        ),
    )(tile_type, x_packed, w_stack, b_stack)

    # ---- unpack: per-type slice + transpose back to [E_t, d_out_t].
    # Downstream code that can consume the [d_out, E] layout directly should
    # skip the .T (and then must mask the padded bias-valued ghost rows). ----
    for t in types:
        e_t = edge_attrs[t].shape[0]
        d_out = params[t][0].shape[0]
        off = row_off[t]
        outs[t] = out_t[:d_out, off:off + e_t].T
    return outs


# -----------------------------------------------------------------------------
# HeteroRawEdgeEncoder (JAX / Pallas version)
# -----------------------------------------------------------------------------
class HeteroRawEdgeEncoder:
    """Per-edge-type linear encoder.

    Parameters follow nn.Linear: W [d_out, d_in], b [d_out], initialized
    U(-1/sqrt(d_in), 1/sqrt(d_in)).  dtype=jnp.bfloat16 halves HBM traffic on
    x/W on all generations (v5e included); accumulation/bias stay in f32
    inside the kernel.
    """

    def __init__(self, dim_emb, dim_in, edge_types, key, dtype=jnp.float32):
        et_names = ["__".join(et) if not isinstance(et, str) else et
                    for et in edge_types]
        if not isinstance(dim_emb, dict):
            dim_emb = {et: dim_emb for et in et_names}
        self.dtype = dtype
        self.params = {}
        for et in et_names:
            d_in, d_out = dim_in[et], dim_emb[et]
            key, kw, kb = jax.random.split(key, 3)
            bound = 1.0 / float(d_in) ** 0.5
            w = jax.random.uniform(kw, (d_out, d_in), jnp.float32, -bound, bound)
            b = jax.random.uniform(kb, (d_out,), jnp.float32, -bound, bound)
            self.params[et] = (w.astype(dtype), b)   # bias kept in f32
        # Homogeneous-batch fallback explicitly uses the FIRST declared edge
        # type's linear (mirrors `list(self.linear.values())[0]` in PyTorch).
        self._first_type = et_names[0]

    def __call__(self, batch_edge_attr, *, tile_e=None):
        if isinstance(batch_edge_attr, dict):
            attrs = {et: x.astype(self.dtype) for et, x in batch_edge_attr.items()}
            return hetero_linear_fused(attrs, self.params, tile_e=tile_e)
        # Homogeneous batch: single edge_attr array through the first linear.
        et = self._first_type
        out = hetero_linear_fused(
            {et: batch_edge_attr.astype(self.dtype)}, {et: self.params[et]},
            tile_e=tile_e)
        return out[et]


# -----------------------------------------------------------------------------
# Demo + correctness check
# -----------------------------------------------------------------------------
if __name__ == "__main__":
    key = jax.random.PRNGKey(0)

    # Synthetic hetero-graph metadata: 3 edge types with different feature dims.
    edge_types = [("node", "pays", "node"),
                  ("node", "receives", "node"),
                  ("node", "owns", "card")]
    dim_in = {"node__pays__node": 16,
              "node__receives__node": 24,
              "node__owns__card": 8}
    dim_emb = 32

    key, k1, k2, k3, kenc = jax.random.split(key, 5)
    batch_edge_attr = {
        "node__pays__node": jax.random.normal(k1, (200, 16), jnp.float32),
        "node__receives__node": jax.random.normal(k2, (130, 24), jnp.float32),
        "node__owns__card": jax.random.normal(k3, (77, 8), jnp.float32),
    }

    encoder = HeteroRawEdgeEncoder(dim_emb, dim_in, edge_types, kenc)
    out = encoder(batch_edge_attr)
    out = jax.tree_util.tree_map(jax.block_until_ready, out)

    ok = True
    for et, x in batch_edge_attr.items():
        w, b = encoder.params[et]
        ref = x @ w.T.astype(jnp.float32) + b
        ok &= out[et].shape == (x.shape[0], dim_emb)
        ok &= bool(jnp.allclose(out[et], ref, atol=5e-3, rtol=5e-3))

    # Homogeneous-batch fallback (uses the first edge type's linear).
    key, kh = jax.random.split(key)
    x_h = jax.random.normal(kh, (50, 16), jnp.float32)
    y_h = jax.block_until_ready(encoder(x_h))
    w0, b0 = encoder.params[encoder._first_type]
    ok &= y_h.shape == (50, dim_emb)
    ok &= bool(jnp.allclose(y_h, x_h @ w0.T + b0, atol=5e-3, rtol=5e-3))

    if ok:
        print("KERNEL_OK")
</pallas_src>

<mosaic_0001>
module attributes {stable_mosaic.version = 11 : i64} {
  func.func @_grouped_linear_kernel(%arg0: i32, %arg1: memref<3xi32, #tpu.memory_space<smem>>, %arg2: memref<256x24xf32, #tpu.memory_space<vmem>>, %arg3: memref<3x32x24xf32, #tpu.memory_space<vmem>>, %arg4: memref<3x32x1xf32, #tpu.memory_space<vmem>>, %arg5: memref<32x256xf32, #tpu.memory_space<vmem>>) attributes {dimension_semantics = [#tpu.dimension_semantics<parallel>], iteration_bounds = array<i64: 3>, scalar_prefetch = 1 : i64, scratch_operands = 0 : i64, tpu.core_type = #tpu.core_type<tc>, window_params = [{transform_indices = @transform_0, window_bounds = array<i64: 256, 24>}, {pipeline_mode = #tpu.pipeline_mode<synchronous>, transform_indices = @transform_1, window_bounds = array<i64: 3, 32, 24>}, {pipeline_mode = #tpu.pipeline_mode<synchronous>, transform_indices = @transform_2, window_bounds = array<i64: 3, 32, 1>}, {transform_indices = @transform_3, window_bounds = array<i64: 32, 256>}]} {
    %0 = arith.index_cast %arg0 : i32 to index
    %1 = memref.load %arg1[%0] : memref<3xi32, #tpu.memory_space<smem>>
    %2 = arith.index_cast %1 : i32 to index
    %c0 = arith.constant 0 : index
    %c0_0 = arith.constant 0 : index
    %3 = vector.load %arg3[%2, %c0, %c0_0] : memref<3x32x24xf32, #tpu.memory_space<vmem>>, vector<1x32x24xf32>
    %4 = vector.shape_cast %3 : vector<1x32x24xf32> to vector<32x24xf32>
    %5 = arith.index_cast %1 : i32 to index
    %c0_1 = arith.constant 0 : index
    %c0_2 = arith.constant 0 : index
    %6 = vector.load %arg4[%5, %c0_1, %c0_2] : memref<3x32x1xf32, #tpu.memory_space<vmem>>, vector<1x32x1xf32>
    %7 = vector.shape_cast %6 : vector<1x32x1xf32> to vector<32x1xf32>
    %c0_3 = arith.constant 0 : index
    %c0_4 = arith.constant 0 : index
    %8 = vector.load %arg2[%c0_3, %c0_4] : memref<256x24xf32, #tpu.memory_space<vmem>>, vector<256x24xf32>
    %cst = arith.constant dense<0.000000e+00> : vector<32x256xf32>
    %9 = tpu.matmul %4, %8, %cst {dimension_numbers = #tpu.dot_dimension_numbers<[1], [1], [0], [0], [0, 0, 1, 0], [], []>} : vector<32x24xf32>, vector<256x24xf32>, vector<32x256xf32> -> vector<32x256xf32>
    %10 = vector.broadcast %7 : vector<32x1xf32> to vector<32x256xf32>
    %11 = arith.addf %9, %10 : vector<32x256xf32>
    %c0_5 = arith.constant 0 : index
    %c0_6 = arith.constant 0 : index
    %12 = vector.load %arg5[%c0_5, %c0_6] : memref<32x256xf32, #tpu.memory_space<vmem>>, vector<32x256xf32>
    tpu.vector_store %arg5[%c0_5, %c0_6], %11 {strides = array<i32>} : memref<32x256xf32, #tpu.memory_space<vmem>>, vector<32x256xf32>,
    return
  }
  func.func @transform_0(%arg0: i32, %arg1: memref<3xi32, #tpu.memory_space<smem>>) -> (i32, i32) {
    %c0_i32 = arith.constant 0 : i32
    %c0_i32_0 = arith.constant 0 : i32
    return %arg0, %c0_i32 : i32, i32
  }
  func.func @transform_1(%arg0: i32, %arg1: memref<3xi32, #tpu.memory_space<smem>>) -> (i32, i32, i32) {
    %c0_i32 = arith.constant 0 : i32
    %c0_i32_0 = arith.constant 0 : i32
    %c0_i32_1 = arith.constant 0 : i32
    %c0_i32_2 = arith.constant 0 : i32
    return %c0_i32, %c0_i32_0, %c0_i32_1 : i32, i32, i32
  }
  func.func @transform_2(%arg0: i32, %arg1: memref<3xi32, #tpu.memory_space<smem>>) -> (i32, i32, i32) {
    %c0_i32 = arith.constant 0 : i32
    %c0_i32_0 = arith.constant 0 : i32
    %c0_i32_1 = arith.constant 0 : i32
    %c0_i32_2 = arith.constant 0 : i32
    return %c0_i32, %c0_i32_0, %c0_i32_1 : i32, i32, i32
  }
  func.func @transform_3(%arg0: i32, %arg1: memref<3xi32, #tpu.memory_space<smem>>) -> (i32, i32) {
    %c0_i32 = arith.constant 0 : i32
    %c0_i32_0 = arith.constant 0 : i32
    return %c0_i32, %arg0 : i32, i32
  }
}

</mosaic_0001>

<bundles_post_ra>
// kernel: tpu_custom_call.1
= control target key start
LH: loop header
LB: loop body
LE: loop exit
PB: predicated region body
PF: predicated region fallthrough
CT: control target
= control target key end

     0   :  { %s712_s18 = smov [#allocation3]   ;;  %s956_s0 = inlined_call_operand.vmem [shape: s32[3], index: 0, kind: input, shape index: {}]   ;;  %s957_s1 = inlined_call_operand.vmem [shape: f32[768,24], index: 1, kind: input, shape index: {}]   ;;  %s958_s2 = inlined_call_operand.vmem [shape: f32[3,32,24], index: 2, kind: input, shape index: {}]   ;;  %s959_s3 = inlined_call_operand.vmem [shape: f32[3,32,1], index: 3, kind: input, shape index: {}]   ;;  %s960_s4 = inlined_call_operand.hbm [shape: f32[32,768], index: 4, kind: output, shape index: {}]  }
   0x1   :  { %s10_s17 = sshll.u32 %s956_s0, 4  ;;  %s11_s17 = int_to_ptr.vmem [resolvable:$true] %s10_s17 }
   0x2   :  { %13 = dma.vmem_to_smem %s11_s17, 16, %s712_s18, [#allocation2] }
   0x3   :  { %690 = dma.done.wait [#allocation2], 16 }
   0x4   :  { %691 = vsyncadd [#allocation2], 4294967280 }
   0x5   :  { %16 = sfence }
   0x6   :  { %17 = vsyncpa [#allocation5], 0 }
   0x7   :  { %19 = vsyncpa [#allocation5 + $0x1], 0  ;;  %s745_s19 = smov 0   ;;  %s747_s20 = smov 0  }
   0x8   :  { %s749_s21 = smov 0   ;;  %s751_s22 = smov 0  }
   0x9 LB: > { %s766_s0 = sadd.s32 4294967295, %s710_s22   ;;  %s502_s23 = sadd.s32 4294967294, %s710_s22   ;;  %s710_s22 = sphi %s751_s22, %s966_s22   ;;  %s706_s21 = sphi %s749_s21, %s965_s21   ;;  %s702_s20 = sphi %s747_s20, %s964_s20   ;;  %s698_s19 = sphi %s745_s19, %s963_s19  }
   0xa   : > { %s770_s24 = sadd.s32 1, %s710_s22   ;;  %s100_s25 = sadd.s32 1, %s706_s21 }
   0xb   : > { %s97_s26 = ssub.s32 %s710_s22, %s770_s24  ;;  %p110_p0 = scmp.ne.s32.totalorder %s706_s21, %s702_s20 }
   0xc   : > { %p98_p1 = scmp.eq.s32.totalorder %s97_s26, 0  ;;  %p111_p2 = scmp.eq.s32.totalorder %s766_s0, 2 }
   0xd   : > { %p116_p3 = scmp.ne.s32.totalorder %s702_s20, %s698_s19  ;;  %p117_p4 = scmp.eq.s32.totalorder %s502_s23, 2 }
   0xe   : > { %s781_s27 = scalar_select %p98_p1, %s706_s21, %s100_s25  }
   0xf   : > { %p783_p5 = por %p111_p2, %p110_p0  ;;  %p787_p6 = por %p117_p4, %p116_p3 }
  0x10   : > { %p505_p7 = scmp.ge.s32.totalorder %s710_s22, 1  ;;  %p150_p8 = scmp.lt.s32.totalorder %s710_s22, 4 }
  0x12   : > { %p151_p9 = pnand %p505_p7, %p150_p8 }
  0x13   : > { %s507_s30 = sshll.u32 (!%p151_p9), %s766_s0, 5  ;;  %s846_s9 = sld [smem:[#allocation3 + %s766_s0]] (!%p151_p9) }
  0x14   : > { %154 = sbr.rel (%p151_p9) target bundleno = 240 (0xf0), region = 32  ;;  %p175_p10 = scmp.lt.s32.totalorder (!%p151_p9), %s507_s30, 95 }
  0x15   : > { %s171_s17 = sand.u32 (!%p151_p9), 1, %s702_s20   ;;  %s555_s25 = sshll.u32 (!%p151_p9), %s766_s0, 4 }
  0x16   : > { %s506_s18 = sshll.u32 (!%p151_p9), %s171_s17, 6  ;;  %s421_s7 = scalar_lea.sflag (!%p151_p9), [#allocation5], %s171_s17 }
  0x17   : > { %s173_s23 = scalar_lea.vmem (!%p151_p9), [#allocation4], %s506_s18  ;;  %s666_s12 = scalar_lea.hbm (!%p151_p9), %s960_s4, 192 }
  0x18   : > { %s433_s6 = sshll.u32 (!%p151_p9), %s173_s23, 4  ;;  %s924_s6 = int_to_ptr.vmem [resolvable:$true] %s433_s6 }
  0x19   : > { %s968_s30 = smov (!%p175_p10, %s507_s30), 95  ;;  %vm245_vm0 = vcmask 195584   ;;  %v713_v20 = vmov 0   ;;  %s509_s10 = sshll.u32 %s846_s9, 5 }
  0x1a   : > { %s508_s5 = sshll.u32 %s968_s30, 3  ;;  %633 = vset.pattern.permute.xlu1 %v713_v20  ;;  %632 = vset.pattern.permute.xlu0 %v713_v20  ;;  %s188_s13 = scalar_lea.vmem %s959_s3, %s509_s10 }
  0x1b   : > { %s797_s8 = scalar_lea.vmem %s957_s1, %s508_s5  ;;  %v191_v23 = vld [vmem:[%s188_s13 + $0x10] sm:$0xff]  ;;  %v189_v24 = vld [vmem:[%s188_s13] sm:$0xff]  ;;  %v192_v29 = vld [vmem:[%s188_s13 + $0x18] sm:$0xff]  ;;  %s183_s16 = scalar_lea.vmem %s958_s2, %s509_s10 }
  0x1c   : > { %v208_v0 = vld [vmem:[%s797_s8 + $0x78] sm:$0xff]  ;;  %v207_v2 = vld [vmem:[%s797_s8 + $0x70] sm:$0xff]  ;;  %v206_v4 = vld [vmem:[%s797_s8 + $0x68] sm:$0xff]  ;;  %237 = vperm.xlu1 %633, %v191_v23   ;;  %227 = vperm.xlu0 %632, %v189_v24   ;;  %s432_s5 = scalar_lea.hbm %s960_s4, %s555_s25 }
  0x1d   : > { %v224_v1 = vld [vmem:[%s797_s8 + $0xf8] sm:$0xff]  ;;  %510 = vmatpush.xpose.msk.msra.mxu0 %vm245_vm0, %v208_v0  ;;  %556 = vmatpush.xpose.msk.msra.mxu2 %vm245_vm0, %v208_v0  ;;  %v223_v3 = vld [vmem:[%s797_s8 + $0xf0] sm:$0xff]  ;;  %v222_v5 = vld [vmem:[%s797_s8 + $0xe8] sm:$0xff]  ;;  %s435_s0 = sshll.u32 %s432_s5, 4  ;;  %s436_s0 = int_to_ptr.hbm [resolvable:$true] %s435_s0 }
  0x1e   : > { %530 = vmatpush.xpose.msk.msra.mxu1 %vm245_vm0, %v224_v1  ;;  %572 = vmatpush.xpose.msk.msra.mxu3 %vm245_vm0, %v224_v1  ;;  %v205_v6 = vld [vmem:[%s797_s8 + $0x60] sm:$0xff]  ;;  %v204_v8 = vld [vmem:[%s797_s8 + $0x58] sm:$0xff]  ;;  %v203_v10 = vld [vmem:[%s797_s8 + $0x50] sm:$0xff] }
  0x1f   : > { %v221_v7 = vld [vmem:[%s797_s8 + $0xe0] sm:$0xff]  ;;  %v220_v9 = vld [vmem:[%s797_s8 + $0xd8] sm:$0xff]  ;;  %v219_v11 = vld [vmem:[%s797_s8 + $0xd0] sm:$0xff] }
  0x20   : > { %v202_v12 = vld [vmem:[%s797_s8 + $0x48] sm:$0xff]  ;;  %v201_v14 = vld [vmem:[%s797_s8 + $0x40] sm:$0xff]  ;;  %v200_v16 = vld [vmem:[%s797_s8 + $0x38] sm:$0xff] }
  0x21   : > { %511 = vmatpush.xpose.msk.msra.mxu0 %vm245_vm0, %v207_v2  ;;  %557 = vmatpush.xpose.msk.msra.mxu2 %vm245_vm0, %v207_v2  ;;  %v218_v13 = vld [vmem:[%s797_s8 + $0xc8] sm:$0xff]  ;;  %v217_v15 = vld [vmem:[%s797_s8 + $0xc0] sm:$0xff]  ;;  %v216_v17 = vld [vmem:[%s797_s8 + $0xb8] sm:$0xff] }
  0x22   : > { %531 = vmatpush.xpose.msk.msra.mxu1 %vm245_vm0, %v223_v3  ;;  %573 = vmatpush.xpose.msk.msra.mxu3 %vm245_vm0, %v223_v3  ;;  %v199_v18 = vld [vmem:[%s797_s8 + $0x30] sm:$0xff]  ;;  %v198_v21 = vld [vmem:[%s797_s8 + $0x28] sm:$0xff]  ;;  %v197_v25 = vld [vmem:[%s797_s8 + $0x20] sm:$0xff] }
  0x23   : > { %v215_v19 = vld [vmem:[%s797_s8 + $0xb0] sm:$0xff]  ;;  %v214_v22 = vld [vmem:[%s797_s8 + $0xa8] sm:$0xff]  ;;  %v213_v26 = vld [vmem:[%s797_s8 + $0xa0] sm:$0xff] }
  0x24   : > { %v196_v27 = vld [vmem:[%s797_s8 + $0x18] sm:$0xff]  ;;  %v190_v30 = vld [vmem:[%s188_s13 + $0x8] sm:$0xff]  ;;  %v195_v31 = vld [vmem:[%s797_s8 + $0x10] sm:$0xff]  ;;  %242 = vperm.xlu1 %633, %v192_v29  }
  0x25   : > { %512 = vmatpush.xpose.msk.msra.mxu0 %vm245_vm0, %v206_v4  ;;  %558 = vmatpush.xpose.msk.msra.mxu2 %vm245_vm0, %v206_v4  ;;  %v212_v28 = vld [vmem:[%s797_s8 + $0x98] sm:$0xff]  ;;  %v211_v32 = vld [vmem:[%s797_s8 + $0x90] sm:$0xff]  ;;  %v194_v33 = vld [vmem:[%s797_s8 + $0x8] sm:$0xff] }
  0x26   : > { %532 = vmatpush.xpose.msk.msra.mxu1 %vm245_vm0, %v222_v5  ;;  %574 = vmatpush.xpose.msk.msra.mxu3 %vm245_vm0, %v222_v5  ;;  %v210_v34 = vld [vmem:[%s797_s8 + $0x88] sm:$0xff]  ;;  %v193_v35 = vld [vmem:[%s797_s8] sm:$0xff]  ;;  %v186_v38 = vld [vmem:[%s183_s16 + $0x10] sm:$0xff] }
  0x27   : > { %232 = vperm.xlu0 %632, %v190_v30   ;;  %v209_v36 = vld [vmem:[%s797_s8 + $0x80] sm:$0xff]  ;;  %v185_v39 = vld [vmem:[%s183_s16 + $0x8] sm:$0xff]  ;;  %v187_v40 = vld [vmem:[%s183_s16 + $0x18] sm:$0xff]  ;;  %s660_s8 = sshra.s32 %s436_s0, 4  ;;  %s661_s8 = int_to_ptr.hbm [resolvable:$true] %s660_s8 }
  0x28   : > { %v184_v37 = vld [vmem:[%s183_s16] sm:$0xff]  ;;  %s662_s9 = scalar_lea.hbm %s661_s8, 64  ;;  %p667_p0 = scmp.lt.s32.totalorder %s661_s8, %s960_s4 }
  0x29   : > { %513 = vmatpush.xpose.msk.msra.mxu0 %vm245_vm0, %v205_v6  ;;  %559 = vmatpush.xpose.msk.msra.mxu2 %vm245_vm0, %v205_v6  ;;  %p663_p11 = scmp.ne.s32.totalorder %s661_s8, %s662_s9  ;;  %p668_p1 = scmp.lt.s32.totalorder %s666_s12, %s662_s9 }
  0x2a   : > { %533 = vmatpush.xpose.msk.msra.mxu1 %vm245_vm0, %v221_v7  ;;  %575 = vmatpush.xpose.msk.msra.mxu3 %vm245_vm0, %v221_v7 }
  0x2b   : > { %p664_p12 = pnand %p663_p11, %p783_p5  ;;  %p669_p2 = por %p668_p1, %p667_p0 }
  0x2d   : > { %514 = vmatpush.xpose.msk.msra.mxu0 %vm245_vm0, %v204_v8  ;;  %560 = vmatpush.xpose.msk.msra.mxu2 %vm245_vm0, %v204_v8  ;;  %p665_p13 = pneg %p664_p12 }
  0x2e   : > { %534 = vmatpush.xpose.msk.msra.mxu1 %vm245_vm0, %v220_v9  ;;  %576 = vmatpush.xpose.msk.msra.mxu3 %vm245_vm0, %v220_v9 }
  0x2f   : > { %p670_p3 = pnand %p669_p2, %p665_p13 }
  0x31   : > { %515 = vmatpush.xpose.msk.msra.mxu0 %vm245_vm0, %v203_v10  ;;  %561 = vmatpush.xpose.msk.msra.mxu2 %vm245_vm0, %v203_v10 }
  0x32   : > { %535 = vmatpush.xpose.msk.msra.mxu1 %vm245_vm0, %v219_v11  ;;  %577 = vmatpush.xpose.msk.msra.mxu3 %vm245_vm0, %v219_v11 }
  0x35   : > { %516 = vmatpush.xpose.msk.msra.mxu0 %vm245_vm0, %v202_v12  ;;  %562 = vmatpush.xpose.msk.msra.mxu2 %vm245_vm0, %v202_v12 }
  0x36   : > { %536 = vmatpush.xpose.msk.msra.mxu1 %vm245_vm0, %v218_v13  ;;  %578 = vmatpush.xpose.msk.msra.mxu3 %vm245_vm0, %v218_v13 }
  0x39   : > { %517 = vmatpush.xpose.msk.msra.mxu0 %vm245_vm0, %v201_v14  ;;  %563 = vmatpush.xpose.msk.msra.mxu2 %vm245_vm0, %v201_v14 }
  0x3a   : > { %537 = vmatpush.xpose.msk.msra.mxu1 %vm245_vm0, %v217_v15  ;;  %579 = vmatpush.xpose.msk.msra.mxu3 %vm245_vm0, %v217_v15 }
  0x3d   : > { %518 = vmatpush.xpose.msk.msra.mxu0 %vm245_vm0, %v200_v16  ;;  %564 = vmatpush.xpose.msk.msra.mxu2 %vm245_vm0, %v200_v16 }
  0x3e   : > { %538 = vmatpush.xpose.msk.msra.mxu1 %vm245_vm0, %v216_v17  ;;  %580 = vmatpush.xpose.msk.msra.mxu3 %vm245_vm0, %v216_v17 }
  0x41   : > { %519 = vmatpush.xpose.msk.msra.mxu0 %vm245_vm0, %v199_v18  ;;  %565 = vmatpush.xpose.msk.msra.mxu2 %vm245_vm0, %v199_v18 }
  0x42   : > { %539 = vmatpush.xpose.msk.msra.mxu1 %vm245_vm0, %v215_v19  ;;  %581 = vmatpush.xpose.msk.msra.mxu3 %vm245_vm0, %v215_v19 }
  0x45   : > { %520 = vmatpush.xpose.msk.msra.mxu0 %vm245_vm0, %v198_v21  ;;  %566 = vmatpush.xpose.msk.msra.mxu2 %vm245_vm0, %v198_v21 }
  0x46   : > { %540 = vmatpush.xpose.msk.msra.mxu1 %vm245_vm0, %v214_v22  ;;  %582 = vmatpush.xpose.msk.msra.mxu3 %vm245_vm0, %v214_v22 }
  0x49   : > { %521 = vmatpush.xpose.msk.msra.mxu0 %vm245_vm0, %v197_v25  ;;  %567 = vmatpush.xpose.msk.msra.mxu2 %vm245_vm0, %v197_v25 }
  0x4a   : > { %541 = vmatpush.xpose.msk.msra.mxu1 %vm245_vm0, %v213_v26  ;;  %583 = vmatpush.xpose.msk.msra.mxu3 %vm245_vm0, %v213_v26 }
  0x4d   : > { %522 = vmatpush.xpose.msk.msra.mxu0 %vm245_vm0, %v196_v27  ;;  %568 = vmatpush.xpose.msk.msra.mxu2 %vm245_vm0, %v196_v27 }
  0x4e   : > { %542 = vmatpush.xpose.msk.msra.mxu1 %vm245_vm0, %v212_v28  ;;  %584 = vmatpush.xpose.msk.msra.mxu3 %vm245_vm0, %v212_v28 }
  0x51   : > { %523 = vmatpush.xpose.msk.msra.mxu0 %vm245_vm0, %v195_v31  ;;  %569 = vmatpush.xpose.msk.msra.mxu2 %vm245_vm0, %v195_v31 }
  0x52   : > { %543 = vmatpush.xpose.msk.msra.mxu1 %vm245_vm0, %v211_v32  ;;  %585 = vmatpush.xpose.msk.msra.mxu3 %vm245_vm0, %v211_v32 }
  0x55   : > { %524 = vmatpush.xpose.msk.msra.mxu0 %vm245_vm0, %v194_v33  ;;  %570 = vmatpush.xpose.msk.msra.mxu2 %vm245_vm0, %v194_v33 }
  0x56   : > { %544 = vmatpush.xpose.msk.msra.mxu1 %vm245_vm0, %v210_v34  ;;  %586 = vmatpush.xpose.msk.msra.mxu3 %vm245_vm0, %v210_v34 }
  0x59   : > { %525 = vmatpush.xpose.msk.msra.mxu0 %vm245_vm0, %v193_v35  ;;  %571 = vmatpush.xpose.msk.msra.mxu2 %vm245_vm0, %v193_v35 }
  0x5a   : > { %545 = vmatpush.xpose.msk.msra.mxu1 %vm245_vm0, %v209_v36  ;;  %587 = vmatpush.xpose.msk.msra.mxu3 %vm245_vm0, %v209_v36 }
  0x5c   : > { %526 = vmatmul.msk.f32.vlgmr.msra.gmra.mxu0 %vm245_vm0, %v184_v37  ;;  %528 = vmatmul.msk.f32.vlgmr.msra.gmra.mxu2 %vm245_vm0, %v186_v38 }
  0x5d   : > { %546 = vmatmul.msk.f32.vlgmr.msra.gmra.mxu1 %vm245_vm0, %v184_v37  ;;  %548 = vmatmul.msk.f32.vlgmr.msra.gmra.mxu3 %vm245_vm0, %v186_v38 }
  0x64   : > { %527 = vmatmul.msk.f32.gmra.mxu0 %vm245_vm0, %v185_v39  ;;  %529 = vmatmul.msk.f32.gmra.mxu2 %vm245_vm0, %v187_v40 }
  0x65   : > { %547 = vmatmul.msk.f32.gmra.mxu1 %vm245_vm0, %v185_v39  ;;  %549 = vmatmul.msk.f32.gmra.mxu3 %vm245_vm0, %v187_v40 }
  0x8e   : > { %v228_v41 = vpop.permute.xlu0 %227  ;;  %v238_v46 = vpop.permute.xlu1 %237 }
  0x96   : > { %v243_v56 = vpop.permute.xlu1 %242 }
  0x99   : > { %v233_v50 = vpop.permute.xlu0 %232 }
  0xd9   : > { %v371_v42 = vpop.f32.mrf.mxu0 }
  0xda   : > { %v372_v43 = vadd.f32 %v371_v42, %v228_v41  ;;  %v400_v44 = vpop.f32.mrf.mxu1 }
  0xdb   : > { %v401_v45 = vadd.f32 %v400_v44, %v228_v41 }
  0xdc   : > { %412 = vst [vmem:[%s173_s23] sm:$0xff] %v372_v43 }
  0xdd   : > { %413 = vst [vmem:[%s173_s23 + $0x8] sm:$0xff] %v401_v45 }
  0xdf   : > { %v377_v47 = vpop.f32.mrf.mxu2 }
  0xe0   : > { %v378_v48 = vadd.f32 %v377_v47, %v238_v46  ;;  %v406_v49 = vpop.f32.mrf.mxu3 }
  0xe1   : > { %v407_v51 = vadd.f32 %v406_v49, %v238_v46  ;;  %v374_v52 = vpop.f32.mrf.mxu0 }
  0xe2   : > { %416 = vst [vmem:[%s173_s23 + $0x20] sm:$0xff] %v378_v48  ;;  %v375_v53 = vadd.f32 %v374_v52, %v233_v50  ;;  %v403_v54 = vpop.f32.mrf.mxu1 }
  0xe3   : > { %417 = vst [vmem:[%s173_s23 + $0x28] sm:$0xff] %v407_v51  ;;  %v404_v55 = vadd.f32 %v403_v54, %v233_v50 }
  0xe4   : > { %414 = vst [vmem:[%s173_s23 + $0x10] sm:$0xff] %v375_v53 }
  0xe5   : > { %415 = vst [vmem:[%s173_s23 + $0x18] sm:$0xff] %v404_v55 }
  0xe7   : > { %v380_v57 = vpop.f32.mrf.mxu2 }
  0xe8   : > { %v381_v58 = vadd.f32 %v380_v57, %v243_v56  ;;  %v409_v59 = vpop.f32.mrf.mxu3 }
  0xe9   : > { %v410_v60 = vadd.f32 %v409_v59, %v243_v56 }
  0xea   : > { %418 = vst [vmem:[%s173_s23 + $0x30] sm:$0xff] %v381_v58 }
  0xeb   : > { %419 = vst [vmem:[%s173_s23 + $0x38] sm:$0xff] %v410_v60 }
  0xec   : > { %673 = shalt.err (!%p670_p3)
}
  0xed   : > { %s714_s15 = smov 256   ;;  %s715_s16 = smov 768  }
  0xee   : > { %s716_s17 = smov 16  }
  0xef   : > { %588 = dma.vmem_to_hbm [thread:$0]  (%p783_p5), %s924_s6, 1024, %s436_s0, %s421_s7, %s714_s15, %s715_s16, %s716_s17  }
  0xf0 PF: > { %p594_p4 = scmp.ge.s32.totalorder %s710_s22, 2  ;;  %s450_s18 = sand.u32 1, %s698_s19  }
  0xf1   : > { %s451_s23 = scalar_lea.sflag [#allocation5], %s450_s18 }
  0xf2   : > { %p591_p7 = pnand %p594_p4, %p787_p6 }
  0xf4   : > { %p592_p8 = pneg %p591_p7 }
  0xf6   : > { %693 = dma.done.wait (%p592_p8), %s451_s23, 1024  }
  0xf7   : > { %695 = vsyncadd (%p592_p8), %s451_s23, 4294966272  ;;  %p22_p9 = scmp.ge.s32.totalorder %s770_s24, 5   ;;  %s963_s19 = smov %s702_s20 }
  0xf8   : > { %s964_s20 = smov %s706_s21  ;;  %s965_s21 = smov %s781_s27 }
  0xf9   : > { %s966_s22 = smov %s770_s24  ;;  %24 = sbr.rel (!%p22_p9) target bundleno = 9 (0x9), region = 69 }
  0xfe   :  { %457 = vsyncpa [#allocation5], 1 }
  0xff   :  { %459 = vsyncpa [#allocation5 + $0x1], 1 }

</bundles_post_ra>
